<compile_context>
chip_gen: v6e
topology: v6e:2x2x1
jax: 0.10.0
libtpu: 0.0.40
codegen_flags: <defaults>
</compile_context>

<pallas_src>
import functools
import math

import jax
import jax.numpy as jnp
from jax import lax
from jax.experimental import pallas as pl
from jax.experimental.pallas import tpu as pltpu


def _mha_kernel(q_ref, k_ref, v_ref, wo_ref, bo_ref, o_ref, acc_ref, *, tk):
    """One (batch, query-tile, head) grid step with an internal causal KV loop.

    q_ref  : (TQ, hd)     bf16  this head's query tile, pre-scaled by 1/sqrt(hd)
    k_ref  : (T,  hd)     bf16  this head's full key sequence
    v_ref  : (T,  hd)     bf16  this head's full value sequence
    wo_ref : (hd, d_out)  bf16  this head's out-projection slice
    bo_ref : (1, d_out)   f32   out-projection bias
    o_ref  : (TQ, d_out)        output block (resident across heads)
    acc_ref: (TQ, d_out)  f32   VMEM accumulator across heads
    """
    qi = pl.program_id(1)
    h = pl.program_id(2)

    @pl.when(h == 0)
    def _init():
        acc_ref[...] = jnp.zeros_like(acc_ref)

    q = q_ref[...]                       # (TQ, hd) bf16
    tq, hd = q.shape

    # Relative (key_col - query_row) offsets, built once per grid step.  Per KV block the
    # causal mask is then a single compare against a scalar threshold.
    col_minus_row = (lax.broadcasted_iota(jnp.int32, (tq, tk), 1)
                     - lax.broadcasted_iota(jnp.int32, (tq, tk), 0))

    q_row0 = qi * tq                           # absolute index of the first query row
    n_kv = pl.cdiv(q_row0 + tq, tk)            # causal skip: key blocks actually attended

    def body(j, carry):
        m_prev, l_prev, ctx_prev = carry
        start = pl.multiple_of(j * tk, tk)
        k_blk = k_ref[pl.ds(start, tk), :]     # (TK, hd) bf16
        v_blk = v_ref[pl.ds(start, tk), :]

        # scores = q @ k_blk.T, transpose folded into the MXU contraction.
        s = lax.dot_general(q, k_blk, (((1,), (1,)), ((), ())),
                            preferred_element_type=jnp.float32)       # (TQ, TK) f32

        # Mask keys with absolute index > absolute query index:
        #   (start + col) > (q_row0 + row)  <=>  (col - row) > (q_row0 - start)
        s = jnp.where(col_minus_row > q_row0 - start, -jnp.inf, s)

        # Online softmax update (f32 stats).
        m_cur = jnp.max(s, axis=-1, keepdims=True)
        m_new = jnp.maximum(m_prev, m_cur)
        alpha = jnp.exp(m_prev - m_new)
        p = jnp.exp(s - m_new)                                         # masked -> 0
        l_new = alpha * l_prev + jnp.sum(p, axis=-1, keepdims=True)
        ctx_new = alpha * ctx_prev + jnp.dot(p.astype(jnp.bfloat16), v_blk,
                                             preferred_element_type=jnp.float32)
        return m_new, l_new, ctx_new

    m0 = jnp.full((tq, 1), -jnp.inf, jnp.float32)
    l0 = jnp.zeros((tq, 1), jnp.float32)
    ctx0 = jnp.zeros((tq, hd), jnp.float32)
    _, l_f, ctx = lax.fori_loop(0, n_kv, body, (m0, l0, ctx0))

    # Normalize AFTER the PV matmul: (TQ, hd) multiply; reciprocal goes to the EUP slot.
    ctx = ctx * pl.reciprocal(l_f, approx=True)

    # Per-head out-projection contribution (replaces the head concat).
    acc_ref[...] += jnp.dot(ctx.astype(jnp.bfloat16), wo_ref[...],
                            preferred_element_type=jnp.float32)

    @pl.when(h == pl.num_programs(2) - 1)
    def _finalize():
        o_ref[...] = (acc_ref[...] + bo_ref[...]).astype(o_ref.dtype)


def _pick_tile(t, max_tile):
    """Largest multiple-of-16 divisor of t that is <= max_tile; falls back to t."""
    if t <= max_tile:
        return t
    tile = (max_tile // 16) * 16
    while tile >= 16:
        if t % tile == 0:
            return tile
        tile -= 16
    # TODO(synk): pad T to a multiple of 16 instead of using a full-sequence tile here.
    return t


def multi_head_attention(x, wq, wk, wv, wo, bo, *, num_heads):
    """x: (B, T, d_in); wq/wk/wv: (d_in, d_out); wo: (d_out, d_out); bo: (d_out,).

    Weights stored as (in_features, out_features), i.e. y = x @ W + b
    (equivalent to nn.Linear with the weight transposed).
    """
    B, T, d_in = x.shape
    d_out = wq.shape[1]
    assert d_out % num_heads == 0
    hd = d_out // num_heads
    scale = 1.0 / math.sqrt(hd)

    # Full-width Q/K/V projections once per batch (XLA matmul, bf16 in / f32 acc),
    # reshaped to (B, H, T, hd); softmax scale folded into Q.  This removes the per-tile
    # K/V recompute and keeps the MXU contraction at full d_in/d_out width.
    xb = x.astype(jnp.bfloat16)
    q = jnp.einsum("btd,dk->btk", xb, wq.astype(jnp.bfloat16),
                   preferred_element_type=jnp.float32)
    k = jnp.einsum("btd,dk->btk", xb, wk.astype(jnp.bfloat16),
                   preferred_element_type=jnp.float32)
    v = jnp.einsum("btd,dk->btk", xb, wv.astype(jnp.bfloat16),
                   preferred_element_type=jnp.float32)
    q = (q * scale).reshape(B, T, num_heads, hd).transpose(0, 2, 1, 3).astype(jnp.bfloat16)
    k = k.reshape(B, T, num_heads, hd).transpose(0, 2, 1, 3).astype(jnp.bfloat16)
    v = v.reshape(B, T, num_heads, hd).transpose(0, 2, 1, 3).astype(jnp.bfloat16)

    wo_h = wo.reshape(num_heads, hd, d_out).astype(jnp.bfloat16)
    bo_2d = bo.reshape(1, d_out).astype(jnp.float32)

    # Query tile capped at 256 (v7x VMEM budget, bf16 sublane packing multiple of 16);
    # KV blocks up to 512 keys per flash step.
    TQ = _pick_tile(T, 256)
    TK = _pick_tile(T, 512)
    n_q = T // TQ

    out_itemsize = jnp.dtype(x.dtype).itemsize
    # Explicit VMEM budget from the actual block sizes (double-buffered inputs/outputs,
    # accumulator scratch, f32 flash intermediates), with 2x headroom, 16 MiB floor,
    # 64 MiB cap (v7x physical VMEM).
    per_step_bytes = (
        2 * TQ * hd * 2                    # q block
        + 2 * 2 * T * hd * 2               # k and v blocks
        + 2 * hd * d_out * 2               # wo block
        + 2 * d_out * 4                    # bias
        + 2 * TQ * d_out * out_itemsize    # output block
        + TQ * d_out * 4                   # acc scratch
        + 6 * TQ * TK * 4                  # scores / exp / mask intermediates
        + 4 * TQ * hd * 4                  # ctx + running stats
    )
    vmem_limit = int(min(max(2 * per_step_bytes, 16 * 1024 * 1024), 64 * 1024 * 1024))

    q_spec = pl.BlockSpec((None, None, TQ, hd), lambda b, qi, h: (b, h, qi, 0))
    kv_spec = pl.BlockSpec((None, None, T, hd), lambda b, qi, h: (b, h, 0, 0))
    wo_spec = pl.BlockSpec((None, hd, d_out), lambda b, qi, h: (h, 0, 0))
    bo_spec = pl.BlockSpec((1, d_out), lambda b, qi, h: (0, 0))
    out_spec = pl.BlockSpec((None, TQ, d_out), lambda b, qi, h: (b, qi, 0))

    kernel = functools.partial(_mha_kernel, tk=TK)

    return pl.pallas_call(
        kernel,
        out_shape=jax.ShapeDtypeStruct((B, T, d_out), x.dtype),
        grid_spec=pltpu.PrefetchScalarGridSpec(
            num_scalar_prefetch=0,
            grid=(B, n_q, num_heads),
            in_specs=[q_spec, kv_spec, kv_spec, wo_spec, bo_spec],
            out_specs=out_spec,
            scratch_shapes=[pltpu.VMEM((TQ, d_out), jnp.float32)],
        ),
        compiler_params=pltpu.CompilerParams(
            dimension_semantics=("parallel", "parallel", "arbitrary"),
            vmem_limit_bytes=vmem_limit,
        ),
    )(q, k, v, wo_h, bo_2d)


def reference_mha(x, wq, wk, wv, wo, bo, *, num_heads):
    """Pure-JAX f32 reference mirroring the PyTorch forward (dropout = identity)."""
    B, T, d_in = x.shape
    d_out = wq.shape[1]
    hd = d_out // num_heads
    q = (x @ wq).reshape(B, T, num_heads, hd).transpose(0, 2, 1, 3)
    k = (x @ wk).reshape(B, T, num_heads, hd).transpose(0, 2, 1, 3)
    v = (x @ wv).reshape(B, T, num_heads, hd).transpose(0, 2, 1, 3)
    scores = jnp.einsum("bhqd,bhkd->bhqk", q, k)
    mask = jnp.triu(jnp.ones((T, T), bool), k=1)
    scores = jnp.where(mask, -jnp.inf, scores)
    w = jax.nn.softmax(scores / math.sqrt(hd), axis=-1)
    ctx = jnp.einsum("bhqk,bhkd->bhqd", w, v).transpose(0, 2, 1, 3).reshape(B, T, d_out)
    return ctx @ wo + bo


if __name__ == "__main__":
    B, T, d_in, d_out, num_heads = 2, 8, 32, 32, 4
    context_length = 16  # >= T, mirrors the module's registered buffer bound

    key = jax.random.PRNGKey(0)
    kx, kq, kk, kv, ko, kb = jax.random.split(key, 6)

    x = jax.random.normal(kx, (B, T, d_in), dtype=jnp.float32)
    # deterministic synthetic parameters (qkv_bias=False; out_proj has bias)
    wq = jax.random.normal(kq, (d_in, d_out), dtype=jnp.float32) * 0.1
    wk = jax.random.normal(kk, (d_in, d_out), dtype=jnp.float32) * 0.1
    wv = jax.random.normal(kv, (d_in, d_out), dtype=jnp.float32) * 0.1
    wo = jax.random.normal(ko, (d_out, d_out), dtype=jnp.float32) * 0.1
    bo = jax.random.normal(kb, (d_out,), dtype=jnp.float32) * 0.1

    out = multi_head_attention(x, wq, wk, wv, wo, bo, num_heads=num_heads)
    out = jax.block_until_ready(out)

    ref = reference_mha(x, wq, wk, wv, wo, bo, num_heads=num_heads)
    assert out.shape == (B, T, d_out)
    # bf16 MXU inputs + approx reciprocal => compare against the f32 reference loosely.
    assert jnp.allclose(out, ref, atol=3e-2, rtol=3e-2), "mismatch vs reference"

    print("KERNEL_OK")
</pallas_src>

<mosaic_0001>
module attributes {stable_mosaic.version = 11 : i64} {
  func.func @_mha_kernel(%arg0: i32, %arg1: i32, %arg2: i32, %arg3: memref<1x1x8x8xbf16, #tpu.memory_space<vmem>>, %arg4: memref<1x1x8x8xbf16, #tpu.memory_space<vmem>>, %arg5: memref<1x1x8x8xbf16, #tpu.memory_space<vmem>>, %arg6: memref<1x8x32xbf16, #tpu.memory_space<vmem>>, %arg7: memref<1x32xf32, #tpu.memory_space<vmem>>, %arg8: memref<1x8x32xf32, #tpu.memory_space<vmem>>, %arg9: memref<8x32xf32, #tpu.memory_space<vmem>>) attributes {dimension_semantics = [#tpu.dimension_semantics<parallel>, #tpu.dimension_semantics<parallel>, #tpu.dimension_semantics<arbitrary>], iteration_bounds = array<i64: 2, 1, 4>, scalar_prefetch = 0 : i64, scratch_operands = 1 : i64, tpu.core_type = #tpu.core_type<tc>, window_params = [{transform_indices = @transform_0, window_bounds = array<i64: 1, 1, 8, 8>}, {transform_indices = @transform_1, window_bounds = array<i64: 1, 1, 8, 8>}, {transform_indices = @transform_2, window_bounds = array<i64: 1, 1, 8, 8>}, {transform_indices = @transform_3, window_bounds = array<i64: 1, 8, 32>}, {pipeline_mode = #tpu.pipeline_mode<synchronous>, transform_indices = @transform_4, window_bounds = array<i64: 1, 32>}, {transform_indices = @transform_5, window_bounds = array<i64: 1, 8, 32>}]} {
    %c0_i32 = arith.constant 0 : i32
    %0 = arith.cmpi eq, %arg2, %c0_i32 : i32
    %1 = arith.extui %0 : i1 to i32
    %c0_i32_0 = arith.constant 0 : i32
    %2 = arith.cmpi ne, %1, %c0_i32_0 : i32
    scf.if %2 {
      %cst_18 = arith.constant 0.000000e+00 : f32
      %31 = vector.broadcast %cst_18 : f32 to vector<8x32xf32>
      %c0_19 = arith.constant 0 : index
      %c0_20 = arith.constant 0 : index
      %32 = vector.load %arg9[%c0_19, %c0_20] : memref<8x32xf32, #tpu.memory_space<vmem>>, vector<8x32xf32>
      tpu.vector_store %arg9[%c0_19, %c0_20], %31 {strides = array<i32>} : memref<8x32xf32, #tpu.memory_space<vmem>>, vector<8x32xf32>,
    } else {
    }
    %c0 = arith.constant 0 : index
    %c0_1 = arith.constant 0 : index
    %c0_2 = arith.constant 0 : index
    %c0_3 = arith.constant 0 : index
    %3 = vector.load %arg3[%c0, %c0_1, %c0_2, %c0_3] : memref<1x1x8x8xbf16, #tpu.memory_space<vmem>>, vector<1x1x8x8xbf16>
    %4 = vector.shape_cast %3 : vector<1x1x8x8xbf16> to vector<8x8xbf16>
    %5 = tpu.iota {dimensions = array<i32: 1>} : vector<8x8xi32>
    %6 = tpu.iota {dimensions = array<i32: 0>} : vector<8x8xi32>
    %7 = arith.subi %5, %6 : vector<8x8xi32>
    %c8_i32 = arith.constant 8 : i32
    %8 = arith.muli %arg1, %c8_i32 : i32
    %c8_i32_4 = arith.constant 8 : i32
    %9 = arith.addi %8, %c8_i32_4 : i32
    %c7_i32 = arith.constant 7 : i32
    %10 = arith.addi %9, %c7_i32 : i32
    %c8_i32_5 = arith.constant 8 : i32
    %11 = arith.divsi %10, %c8_i32_5 : i32
    %cst = arith.constant 0xFF800000 : f32
    %12 = vector.broadcast %cst : f32 to vector<8x1xf32>
    %cst_6 = arith.constant 0.000000e+00 : f32
    %13 = vector.broadcast %cst_6 : f32 to vector<8x1xf32>
    %cst_7 = arith.constant 0.000000e+00 : f32
    %14 = vector.broadcast %cst_7 : f32 to vector<8x8xf32>
    %c0_i32_8 = arith.constant 0 : i32
    %15 = arith.subi %11, %c0_i32_8 : i32
    %16 = arith.addi %c0_i32_8, %15 : i32
    %c1_i32 = arith.constant 1 : i32
    %17:3 = scf.for %arg10 = %c0_i32_8 to %16 step %c1_i32 iter_args(%arg11 = %12, %arg12 = %13, %arg13 = %14) -> (vector<8x1xf32>, vector<8x1xf32>, vector<8x8xf32>)  : i32 {
      %c8_i32_18 = arith.constant 8 : i32
      %31 = arith.muli %arg10, %c8_i32_18 : i32
      %32 = tpu.assume_multiple %31, 8 : i32
      %c0_19 = arith.constant 0 : index
      %c0_20 = arith.constant 0 : index
      %33 = arith.index_cast %32 : i32 to index
      %c0_21 = arith.constant 0 : index
      %34 = vector.load %arg4[%c0_19, %c0_20, %33, %c0_21] : memref<1x1x8x8xbf16, #tpu.memory_space<vmem>>, vector<1x1x8x8xbf16>
      %35 = vector.shape_cast %34 : vector<1x1x8x8xbf16> to vector<8x8xbf16>
      %c0_22 = arith.constant 0 : index
      %c0_23 = arith.constant 0 : index
      %36 = arith.index_cast %32 : i32 to index
      %c0_24 = arith.constant 0 : index
      %37 = vector.load %arg5[%c0_22, %c0_23, %36, %c0_24] : memref<1x1x8x8xbf16, #tpu.memory_space<vmem>>, vector<1x1x8x8xbf16>
      %38 = vector.shape_cast %37 : vector<1x1x8x8xbf16> to vector<8x8xbf16>
      %cst_25 = arith.constant dense<0.000000e+00> : vector<8x8xf32>
      %39 = tpu.matmul %4, %35, %cst_25 {dimension_numbers = #tpu.dot_dimension_numbers<[1], [1], [0], [0], [0, 0, 1, 0], [], []>} : vector<8x8xbf16>, vector<8x8xbf16>, vector<8x8xf32> -> vector<8x8xf32>
      %40 = arith.subi %8, %32 : i32
      %41 = vector.broadcast %40 : i32 to vector<8x8xi32>
      %42 = arith.cmpi sgt, %7, %41 : vector<8x8xi32>
      %cst_26 = arith.constant 0xFF800000 : f32
      %43 = vector.broadcast %cst_26 : f32 to vector<8x8xf32>
      %44 = arith.select %42, %43, %39 : vector<8x8xi1>, vector<8x8xf32>
      %cst_27 = arith.constant dense<0xFF800000> : vector<8xf32>
      %45 = vector.multi_reduction <maximumf>, %44, %cst_27 [1] : vector<8x8xf32> to vector<8xf32>
      %46 = vector.shape_cast %45 : vector<8xf32> to vector<8x1xf32>
      %47 = arith.maximumf %arg11, %46 : vector<8x1xf32>
      %48 = arith.subf %arg11, %47 : vector<8x1xf32>
      %49 = math.exp %48 : vector<8x1xf32>
      %50 = vector.broadcast %47 : vector<8x1xf32> to vector<8x8xf32>
      %51 = arith.subf %44, %50 : vector<8x8xf32>
      %52 = math.exp %51 : vector<8x8xf32>
      %53 = arith.mulf %49, %arg12 : vector<8x1xf32>
      %cst_28 = arith.constant dense<0.000000e+00> : vector<8xf32>
      %54 = vector.multi_reduction <add>, %52, %cst_28 [1] : vector<8x8xf32> to vector<8xf32>
      %55 = vector.shape_cast %54 : vector<8xf32> to vector<8x1xf32>
      %56 = arith.addf %53, %55 : vector<8x1xf32>
      %57 = vector.broadcast %49 : vector<8x1xf32> to vector<8x8xf32>
      %58 = arith.mulf %57, %arg13 : vector<8x8xf32>
      %59 = arith.truncf %52 : vector<8x8xf32> to vector<8x8xbf16>
      %cst_29 = arith.constant dense<0.000000e+00> : vector<8x8xf32>
      %60 = tpu.matmul %59, %38, %cst_29 {dimension_numbers = #tpu.dot_dimension_numbers<[1], [0], [0], [1], [0, 0, 1, 1], [], []>} : vector<8x8xbf16>, vector<8x8xbf16>, vector<8x8xf32> -> vector<8x8xf32>
      %61 = arith.addf %58, %60 : vector<8x8xf32>
      scf.yield %47, %56, %61 : vector<8x1xf32>, vector<8x1xf32>, vector<8x8xf32>
    }
    %18 = tpu.reciprocal %17#1 {approx = true} : vector<8x1xf32> -> vector<8x1xf32>
    %19 = vector.broadcast %18 : vector<8x1xf32> to vector<8x8xf32>
    %20 = arith.mulf %17#2, %19 : vector<8x8xf32>
    %c0_9 = arith.constant 0 : index
    %c0_10 = arith.constant 0 : index
    %21 = vector.load %arg9[%c0_9, %c0_10] : memref<8x32xf32, #tpu.memory_space<vmem>>, vector<8x32xf32>
    %22 = arith.truncf %20 : vector<8x8xf32> to vector<8x8xbf16>
    %c0_11 = arith.constant 0 : index
    %c0_12 = arith.constant 0 : index
    %c0_13 = arith.constant 0 : index
    %23 = vector.load %arg6[%c0_11, %c0_12, %c0_13] : memref<1x8x32xbf16, #tpu.memory_space<vmem>>, vector<1x8x32xbf16>
    %24 = vector.shape_cast %23 : vector<1x8x32xbf16> to vector<8x32xbf16>
    %cst_14 = arith.constant dense<0.000000e+00> : vector<8x32xf32>
    %25 = tpu.matmul %22, %24, %cst_14 {dimension_numbers = #tpu.dot_dimension_numbers<[1], [0], [0], [1], [0, 0, 1, 1], [], []>} : vector<8x8xbf16>, vector<8x32xbf16>, vector<8x32xf32> -> vector<8x32xf32>
    %26 = arith.addf %21, %25 : vector<8x32xf32>
    %c0_15 = arith.constant 0 : index
    %c0_16 = arith.constant 0 : index
    %27 = vector.load %arg9[%c0_15, %c0_16] : memref<8x32xf32, #tpu.memory_space<vmem>>, vector<8x32xf32>
    tpu.vector_store %arg9[%c0_15, %c0_16], %26 {strides = array<i32>} : memref<8x32xf32, #tpu.memory_space<vmem>>, vector<8x32xf32>,
    %c3_i32 = arith.constant 3 : i32
    %28 = arith.cmpi eq, %arg2, %c3_i32 : i32
    %29 = arith.extui %28 : i1 to i32
    %c0_i32_17 = arith.constant 0 : i32
    %30 = arith.cmpi ne, %29, %c0_i32_17 : i32
    scf.if %30 {
      %c0_18 = arith.constant 0 : index
      %c0_19 = arith.constant 0 : index
      %31 = vector.load %arg9[%c0_18, %c0_19] : memref<8x32xf32, #tpu.memory_space<vmem>>, vector<8x32xf32>
      %c0_20 = arith.constant 0 : index
      %c0_21 = arith.constant 0 : index
      %32 = vector.load %arg7[%c0_20, %c0_21] : memref<1x32xf32, #tpu.memory_space<vmem>>, vector<1x32xf32>
      %33 = vector.broadcast %32 : vector<1x32xf32> to vector<8x32xf32>
      %34 = arith.addf %31, %33 : vector<8x32xf32>
      %c0_22 = arith.constant 0 : index
      %c0_23 = arith.constant 0 : index
      %c0_24 = arith.constant 0 : index
      %35 = vector.load %arg8[%c0_22, %c0_23, %c0_24] : memref<1x8x32xf32, #tpu.memory_space<vmem>>, vector<1x8x32xf32>
      %36 = vector.shape_cast %35 : vector<1x8x32xf32> to vector<8x32xf32>
      %37 = vector.shape_cast %34 : vector<8x32xf32> to vector<1x8x32xf32>
      tpu.vector_store %arg8[%c0_22, %c0_23, %c0_24], %37 {strides = array<i32>} : memref<1x8x32xf32, #tpu.memory_space<vmem>>, vector<1x8x32xf32>,
    } else {
    }
    return
  }
  func.func @transform_0(%arg0: i32, %arg1: i32, %arg2: i32) -> (i32, i32, i32, i32) {
    %c0_i32 = arith.constant 0 : i32
    %c0_i32_0 = arith.constant 0 : i32
    return %arg0, %arg2, %arg1, %c0_i32 : i32, i32, i32, i32
  }
  func.func @transform_1(%arg0: i32, %arg1: i32, %arg2: i32) -> (i32, i32, i32, i32) {
    %c0_i32 = arith.constant 0 : i32
    %c0_i32_0 = arith.constant 0 : i32
    %c0_i32_1 = arith.constant 0 : i32
    return %arg0, %arg2, %c0_i32, %c0_i32_0 : i32, i32, i32, i32
  }
  func.func @transform_2(%arg0: i32, %arg1: i32, %arg2: i32) -> (i32, i32, i32, i32) {
    %c0_i32 = arith.constant 0 : i32
    %c0_i32_0 = arith.constant 0 : i32
    %c0_i32_1 = arith.constant 0 : i32
    return %arg0, %arg2, %c0_i32, %c0_i32_0 : i32, i32, i32, i32
  }
  func.func @transform_3(%arg0: i32, %arg1: i32, %arg2: i32) -> (i32, i32, i32) {
    %c0_i32 = arith.constant 0 : i32
    %c0_i32_0 = arith.constant 0 : i32
    %c0_i32_1 = arith.constant 0 : i32
    return %arg2, %c0_i32, %c0_i32_0 : i32, i32, i32
  }
  func.func @transform_4(%arg0: i32, %arg1: i32, %arg2: i32) -> (i32, i32) {
    %c0_i32 = arith.constant 0 : i32
    %c0_i32_0 = arith.constant 0 : i32
    %c0_i32_1 = arith.constant 0 : i32
    return %c0_i32, %c0_i32_0 : i32, i32
  }
  func.func @transform_5(%arg0: i32, %arg1: i32, %arg2: i32) -> (i32, i32, i32) {
    %c0_i32 = arith.constant 0 : i32
    %c0_i32_0 = arith.constant 0 : i32
    return %arg0, %arg1, %c0_i32 : i32, i32, i32
  }
}

</mosaic_0001>

<bundles_post_ra>
// kernel: tpu_custom_call.1
= control target key start
LH: loop header
LB: loop body
LE: loop exit
PB: predicated region body
PF: predicated region fallthrough
CT: control target
= control target key end

     0   :  { %s1763_s0 = inlined_call_operand.hbm [shape: bf16[2,4,8,8], index: 0, kind: input, shape index: {}]   ;;  %s1764_s1 = inlined_call_operand.hbm [shape: bf16[2,4,8,8], index: 1, kind: input, shape index: {}]   ;;  %s1765_s2 = inlined_call_operand.hbm [shape: bf16[2,4,8,8], index: 2, kind: input, shape index: {}]   ;;  %s1766_s3 = inlined_call_operand.hbm [shape: bf16[4,8,32], index: 3, kind: input, shape index: {}]   ;;  %s1767_s4 = inlined_call_operand.vmem [shape: f32[1,32], index: 4, kind: input, shape index: {}]   ;;  %s1768_s5 = inlined_call_operand.hbm [shape: f32[2,8,32], index: 5, kind: output, shape index: {}]  }
   0x1   :  { %1782 = sst [smem:[#allocation26_spill]] %s1763_s0 }
   0x2   :  { %1783 = sst [smem:[#allocation27_spill]] %s1764_s1 }
   0x3   :  { %1784 = sst [smem:[#allocation28_spill]] %s1767_s4 }
   0x4   :  { %1785 = sst [smem:[#allocation29_spill]] %s1768_s5 }
   0x5   :  { %10 = vsyncpa [#allocation4], 0 }
   0x6   :  { %12 = vsyncpa [#allocation4 + $0x1], 0 }
   0x7   :  { %13 = vsyncpa [#allocation7], 0 }
   0x8   :  { %15 = vsyncpa [#allocation7 + $0x1], 0 }
   0x9   :  { %16 = vsyncpa [#allocation10], 0 }
   0xa   :  { %18 = vsyncpa [#allocation10 + $0x1], 0 }
   0xb   :  { %19 = vsyncpa [#allocation5], 0 }
   0xc   :  { %21 = vsyncpa [#allocation5 + $0x1], 0  ;;  %s1380_s18 = smov 0   ;;  %s1382_s19 = smov 0  }
   0xd   :  { %s1384_s20 = smov 0   ;;  %s1386_s21 = smov 0  }
   0xe   :  { %s1388_s22 = smov 0   ;;  %s1390_s23 = smov 0  }
   0xf   :  { %s1392_s24 = smov 0   ;;  %s1394_s25 = smov 0  }
  0x10   :  { %s1396_s26 = smov 0   ;;  %s1398_s27 = smov 0  }
  0x11   :  { %s1400_s28 = smov 0   ;;  %s1402_s29 = smov 0  }
  0x12   :  { %s1404_s30 = smov 0   ;;  %s1406_s6 = smov 0  }
  0x13 LB: > { %1786 = sst [smem:[#allocation16_spill]] %s1270_s18  ;;  %s1449_s7 = sadd.s32 4294967295, %s1322_s6   ;;  %s1322_s6 = sphi %s1406_s6, %s27_s6   ;;  %s1318_s30 = sphi %s1404_s30, %s1826_s30   ;;  %s1314_s29 = sphi %s1402_s29, %s1837_s29   ;;  %s1310_s28 = sphi %s1400_s28, %s1824_s28   ;;  %s1306_s27 = sphi %s1398_s27, %s1836_s27   ;;  %s1302_s26 = sphi %s1396_s26, %s1835_s26   ;;  %s1298_s25 = sphi %s1394_s25, %s1834_s25   ;;  %s1294_s24 = sphi %s1392_s24, %s1833_s24   ;;  %s1290_s23 = sphi %s1390_s23, %s1832_s23   ;;  %s1286_s22 = sphi %s1388_s22, %s1831_s22   ;;  %s1282_s21 = sphi %s1386_s21, %s1830_s21   ;;  %s1278_s20 = sphi %s1384_s20, %s1829_s20   ;;  %s1274_s19 = sphi %s1382_s19, %s1828_s19   ;;  %s1270_s18 = sphi %s1380_s18, %s1827_s18  }
  0x14   : > { %1787 = sst [smem:[#allocation17_spill]] %s1278_s20  ;;  %s801_s8 = sadd.s32 4294967294, %s1322_s6  }
  0x15   : > { %1788 = sst [smem:[#allocation18_spill]] %s1310_s28  ;;  %s39_s9 = sadd.s32 1, %s1314_s29 }
  0x16   : > { %1789 = sst [smem:[#allocation19_spill]] %s1318_s30  ;;  %s46_s10 = sadd.s32 1, %s1318_s30 }
  0x17   : > { %p40_p0 = scmp.ge.s32.totalorder %s39_s9, 4  ;;  %s57_s11 = sadd.s32 1, %s1302_s26 }
  0x18   : > { %p64_p1 = scmp.ne.s32.totalorder %s1302_s26, %s1298_s25  ;;  %p1781_p2 = scmp.eq.s32.totalorder %s1322_s6, 0 }
  0x19   : > { %s1839_s9 = smov (%p40_p0, %s39_s9), 0  ;;  %s1841_s10 = smov (!%p40_p0, %s46_s10), %s1318_s30 }
  0x1a   : > { %1790 = sst [smem:[#allocation20_spill]] %s1839_s9  ;;  %s1463_s12 = ssub.s32 %s1314_s29, %s1839_s9 }
  0x1b   : > { %p1467_p3 = por %p1781_p2, %p64_p1  ;;  %p48_p4 = scmp.ge.s32.totalorder %s1841_s10, 2 }
  0x1c   : > { %p70_p5 = scmp.ne.s32.totalorder %s1298_s25, %s1294_s24  ;;  %p1780_p6 = scmp.eq.s32.totalorder %s1449_s7, 0 }
  0x1d   : > { %p137_p7 = scmp.eq.s32.totalorder %s1463_s12, 0  ;;  %s1843_s10 = smov (%p48_p4, %s1841_s10), 0 }
  0x1e   : > { %1792 = sst [smem:[#allocation21_spill]] %s1843_s10  ;;  %p1478_p8 = por %p1780_p6, %p70_p5 }
  0x1f   : > { %s188_s15 = sadd.s32 1, %s1278_s20  ;;  %s50_s16 = ssub.s32 %s1318_s30, %s1843_s10 }
  0x20   : > { %p198_p9 = scmp.ne.s32.totalorder %s1278_s20, %s1274_s19  ;;  %s52_s17 = sor.u32 %s1463_s12, %s50_s16 }
  0x21   : > { %p186_p10 = scmp.eq.s32.totalorder %s50_s16, 0  ;;  %p55_p11 = scmp.eq.s32.totalorder %s52_s17, 0 }
  0x22   : > { %p199_p12 = scmp.eq.s32.totalorder %s1449_s7, 7  ;;  %p204_p0 = scmp.ne.s32.totalorder %s1274_s19, %s1270_s18 }
  0x23   : > { %s1490_s24 = scalar_select %p186_p10, %s1278_s20, %s188_s15  }
  0x24   : > { %s1493_s9 = scalar_select %p55_p11, %s1302_s26, %s57_s11  }
  0x25   : > { %1794 = sst [smem:[#allocation22_spill]] %s1490_s24  ;;  %p1495_p13 = por %p199_p12, %p198_p9 }
  0x26   : > { %1795 = sst [smem:[#allocation23_spill]] %s1493_s9  ;;  %p205_p1 = scmp.eq.s32.totalorder %s801_s8, 7 }
  0x27   : > { %s1796_s5 = scalar_select %p1495_p13, 1, 0 }
  0x28   : > { %p1779_p4 = scmp.lt.s32.totalorder %s1322_s6, 8  ;;  %s1773_s10 = sand.u32 1, %s1302_s26  }
  0x29   : > { %1797 = sst [smem:[#allocation24_spill]] %s1796_s5  ;;  %p1503_p5 = por %p205_p1, %p204_p0 }
  0x2a   : > { %s1509_s16 = sshll.u32 %s1773_s10, 2  ;;  %s805_s15 = sshll.u32 %s1318_s30, 2 }
  0x2b   : > { %s1798_s28 = scalar_select %p1503_p5, 1, 0 }
  0x2c   : > { %p1516_p9 = pnand %p1779_p4, %p1467_p3  ;;  %s238_s8 = sadd.s32 %s1314_s29, %s805_s15 }
  0x2d   : > { %1799 = sst [smem:[#allocation25_spill]] %s1798_s28  ;;  %s249_s17 = sand.u32 1, %s1322_s6  }
  0x2e   : > { %s1522_s9 = sshll.u32 %s238_s8, 6  ;;  %s1801_s1 = sld [smem:[#allocation27_spill]] }
  0x2f   : > { %s253_s28 = scalar_lea.vmem [#allocation6], %s1509_s16  ;;  %p815_p10 = scmp.ge.s32.totalorder %s1322_s6, 1 }
  0x30   : > { %s262_s18 = sshll.u32 %s253_s28, 4  ;;  %s1530_s13 = scalar_lea.sflag [#allocation7], %s249_s17  ;;  %s263_s18 = int_to_ptr.vmem [resolvable:$true] %s262_s18 }
  0x31   : > { %p1044_p3 = pneg %p1516_p9  ;;  %s1055_s30 = scalar_lea.vmem %s263_s18, 64 }
  0x32   : > { %p1056_p11 = scmp.ne.s32.totalorder %s263_s18, %s1055_s30  ;;  %s1340_s15 = smov [#allocation6]  }
  0x33   : > { %s1060_s8 = sshll.u32 %s1340_s15, 4  ;;  %s1061_s8 = int_to_ptr.vmem [resolvable:$false] %s1060_s8 }
  0x34   : > { %s260_s10 = scalar_lea.hbm %s1801_s1, %s1522_s9  ;;  %p1058_p12 = pnand %p1056_p11, %p1044_p3 }
  0x35   : > { %s1062_s5 = scalar_lea.vmem %s1061_s8, 128  ;;  %p1063_p1 = scmp.lt.s32.totalorder %s263_s18, %s1061_s8 }
  0x36   : > { %p1059_p0 = pneg %p1058_p12  ;;  %p1064_p4 = scmp.lt.s32.totalorder %s1062_s5, %s1055_s30 }
  0x38   : > { %p1065_p6 = por %p1064_p4, %p1063_p1 }
  0x3a   : > { %p1066_p2 = pnand %p1065_p6, %p1059_p0 }
  0x3c   : > { %1069 = shalt.err (!%p1066_p2)
}
  0x3d   : > { %874 = dma.hbm_to_vmem [thread:$0]  (!%p1516_p9), %s260_s10, 64, %s263_s18, %s1530_s13  }
  0x3e   : > { %p305_p11 = scmp.lt.s32.totalorder %s1322_s6, 9  ;;  %s1803_s0 = sld [smem:[#allocation26_spill]] }
  0x3f   : > { %s232_s24 = scalar_lea.vmem [#allocation3], %s1509_s16  ;;  %s1804_s15 = sand.u32 1, %s1302_s26  }
  0x40   : > { %p1543_p12 = pnand %p815_p10, %p305_p11  ;;  %s242_s17 = sshll.u32 %s232_s24, 4  ;;  %s243_s17 = int_to_ptr.vmem [resolvable:$true] %s242_s17 }
  0x41   : > { %s229_s8 = scalar_lea.sflag [#allocation4], %s1804_s15  ;;  %s1083_s1 = scalar_lea.vmem %s243_s17, 64 }
  0x42   : > { %p1084_p2 = scmp.ne.s32.totalorder %s243_s17, %s1083_s1  ;;  %s1341_s18 = smov [#allocation3]  }
  0x43   : > { %s1088_s10 = sshll.u32 %s1341_s18, 4  ;;  %s1089_s10 = int_to_ptr.vmem [resolvable:$false] %s1088_s10 }
  0x44   : > { %s240_s30 = scalar_lea.hbm %s1803_s0, %s1522_s9  ;;  %p1086_p6 = pnand %p1084_p2, %p1044_p3 }
  0x45   : > { %s1090_s4 = scalar_lea.vmem %s1089_s10, 128  ;;  %p1091_p10 = scmp.lt.s32.totalorder %s243_s17, %s1089_s10 }
  0x46   : > { %p1087_p4 = pneg %p1086_p6  ;;  %p1092_p0 = scmp.lt.s32.totalorder %s1090_s4, %s1083_s1 }
  0x48   : > { %p1093_p1 = por %p1092_p0, %p1091_p10 }
  0x4a   : > { %p1094_p11 = pnand %p1093_p1, %p1087_p4 }
  0x4c   : > { %1097 = shalt.err (!%p1094_p11)
}
  0x4d   : > { %871 = dma.hbm_to_vmem [thread:$0]  (!%p1516_p9), %s240_s30, 64, %s243_s17, %s229_s8  }
  0x4e   : > { %s280_s24 = scalar_lea.hbm %s1765_s2, %s1522_s9  ;;  %s273_s15 = scalar_lea.vmem [#allocation8], %s1509_s16 }
  0x4f   : > { %s282_s0 = sshll.u32 %s273_s15, 4  ;;  %s1342_s1 = smov [#allocation8]   ;;  %s283_s0 = int_to_ptr.vmem [resolvable:$true] %s282_s0 }
  0x50   : > { %s1111_s18 = scalar_lea.vmem %s283_s0, 64  ;;  %s1116_s4 = sshll.u32 %s1342_s1, 4  ;;  %s1117_s4 = int_to_ptr.vmem [resolvable:$false] %s1116_s4 }
  0x51   : > { %p1112_p2 = scmp.ne.s32.totalorder %s283_s0, %s1111_s18  ;;  %s1118_s10 = scalar_lea.vmem %s1117_s4, 128 }
  0x52   : > { %p1119_p10 = scmp.lt.s32.totalorder %s283_s0, %s1117_s4  ;;  %p1120_p0 = scmp.lt.s32.totalorder %s1118_s10, %s1111_s18 }
  0x53   : > { %p1114_p6 = pnand %p1112_p2, %p1044_p3 }
  0x54   : > { %p1121_p1 = por %p1120_p0, %p1119_p10 }
  0x55   : > { %p1115_p4 = pneg %p1114_p6 }
  0x57   : > { %p1122_p11 = pnand %p1121_p1, %p1115_p4 }
  0x59   : > { %1125 = shalt.err (!%p1122_p11)
}
  0x5a   : > { %877 = dma.hbm_to_vmem [thread:$0]  (!%p1516_p9), %s280_s24, 64, %s283_s0, %s1530_s13  }
  0x5b   : > { %s139_s9 = sadd.s32 1, %s1290_s23  ;;  %p146_p3 = scmp.ne.s32.totalorder %s1290_s23, %s1286_s22 }
  0x5c   : > { %s1574_s16 = scalar_select %p137_p7, %s1290_s23, %s139_s9  }
  0x5d   : > { %p152_p2 = scmp.ne.s32.totalorder %s1286_s22, %s1282_s21  ;;  %s289_s11 = sand.u32 1, %s1290_s23  }
  0x5e   : > { %s814_s30 = sshll.u32 %s1314_s29, 6  ;;  %p1805_p6 = scmp.eq.s32.totalorder %s1322_s6, 0 }
  0x5f   : > { %p1806_p10 = scmp.eq.s32.totalorder %s1449_s7, 0  ;;  %s813_s8 = sshll.u32 %s289_s11, 2 }
  0x60   : > { %p148_p4 = por %p146_p3, %p1805_p6  ;;  %s298_s0 = scalar_lea.hbm %s1766_s3, %s814_s30 }
  0x61   : > { %p1586_p0 = por %p152_p2, %p1806_p10  ;;  %s293_s13 = scalar_lea.vmem [#allocation9], %s813_s8 }
  0x62   : > { %s300_s12 = sshll.u32 %s293_s13, 4  ;;  %p1808_p7 = scmp.lt.s32.totalorder %s1322_s6, 8  ;;  %s301_s12 = int_to_ptr.vmem [resolvable:$true] %s300_s12 }
  0x63   : > { %s290_s21 = scalar_lea.sflag [#allocation10], %s289_s11  ;;  %s1139_s15 = scalar_lea.vmem %s301_s12, 64 }
  0x64   : > { %p1595_p9 = pnand %p1808_p7, %p148_p4  ;;  %p1140_p11 = scmp.ne.s32.totalorder %s301_s12, %s1139_s15 }
  0x65   : > { %s1343_s18 = smov [#allocation9]  }
  0x66   : > { %p1128_p1 = pneg %p1595_p9  ;;  %s1144_s1 = sshll.u32 %s1343_s18, 4  ;;  %s1145_s1 = int_to_ptr.vmem [resolvable:$false] %s1144_s1 }
  0x67   : > { %s1146_s4 = scalar_lea.vmem %s1145_s1, 128  ;;  %p1147_p6 = scmp.lt.s32.totalorder %s301_s12, %s1145_s1 }
  0x68   : > { %p1142_p3 = pnand %p1140_p11, %p1128_p1  ;;  %p1148_p10 = scmp.lt.s32.totalorder %s1146_s4, %s1139_s15 }
  0x6a   : > { %p1143_p2 = pneg %p1142_p3  ;;  %p1149_p5 = por %p1148_p10, %p1147_p6 }
  0x6c   : > { %p1150_p4 = pnand %p1149_p5, %p1143_p2 }
  0x6e   : > { %1153 = shalt.err (!%p1150_p4)
}
  0x6f   : > { %880 = dma.hbm_to_vmem [thread:$0]  (!%p1595_p9), %s298_s0, 64, %s301_s12, %s290_s21  }
  0x70   : > { %309 = sbr.rel (%p1543_p12) target bundleno = 936 (0x3a8), region = 40  ;;  %s311_s10 = sand.u32 (!%p1543_p12), 1, %s1298_s25  }
  0x71   : > { %s1606_s9 = sshll.u32 (!%p1543_p12), %s311_s10, 2  ;;  %s312_s11 = scalar_lea.sflag (!%p1543_p12), [#allocation4], %s311_s10 }
  0x72   : > { %s315_s30 = scalar_lea.vmem (!%p1543_p12), [#allocation3], %s1606_s9 }
  0x75   : > { %1253 = dma.done.wait (%p1478_p8), %s312_s11, 64  }
  0x76   : > { %1255 = vsyncadd (%p1478_p8), %s312_s11, 4294967232  ;;  %s320_s8 = sand.u32 1, %s1449_s7   ;;  %s324_s20 = scalar_lea.vmem [#allocation6], %s1606_s9 }
  0x77   : > { %s321_s5 = scalar_lea.sflag [#allocation7], %s320_s8 }
  0x78   : > { %1257 = dma.done.wait (%p1478_p8), %s321_s5, 128  }
  0x79   : > { %1259 = vsyncadd (%p1478_p8), %s321_s5, 4294967168  ;;  %s338_s28 = sand.u32 1, %s1286_s22   ;;  %s333_s13 = scalar_lea.vmem [#allocation8], %s1606_s9 }
  0x7a   : > { %s1620_s0 = sshll.u32 %s338_s28, 2  ;;  %s339_s12 = scalar_lea.sflag [#allocation10], %s338_s28 }
  0x7b   : > { %s342_s24 = scalar_lea.vmem [#allocation9], %s1620_s0 }
  0x7c   : > { %1261 = dma.done.wait (%p1586_p0), %s339_s12, 64  }
  0x7d   : > { %1263 = vsyncadd (%p1586_p0), %s339_s12, 4294967232  ;;  %s381_s7 = sand.u32 1, %s1274_s19   ;;  %p821_p8 = scmp.ne.s32.totalorder %s1306_s27, 0 }
  0x7e   : > { %s1631_s14 = sshll.u32 %s381_s7, 3 }
  0x7f   : > { %s383_s21 = scalar_lea.vmem [#allocation11], %s1631_s14  ;;  %388 = sbr.rel (%p821_p8) target bundleno = 134 (0x86), region = 60 }
  0x84   : > { %vm389_vm0 = vcmask 261120   ;;  %v1344_v0 = vmov 0.0  }
  0x85   : > { %390 = vst.msk [vmem:[#allocation2] sm:$0xff] %vm389_vm0, %v1344_v0 }
  0x86 PF: > { %v1635_v1 = vld [vmem:[%s315_s30] sm:$0xf]  ;;  %v392_v2 = vlaneseq  ;;  %v1643_v6 = vmov 0.0   ;;  %v1645_v7 = vmov 0.0   ;;  %v1647_v8 = vmov -inf   ;;  %s1649_s17 = smov 0  }
  0x88   : > { %v1637_v3 = vand.u32 127, %v392_v2  ;;  %v1639_v4 = vshrl.u32 %v392_v2, 7 }
  0x8a   : > { %v396_v5 = vsub.s32 %v1637_v3, %v1639_v4 }
  0x8b LB: >> { %v1345_v9 = vmov 0.0   ;;  %vm1346_vm1 = vmmov 0   ;;  %s822_s15 = sshll.u32 %s1338_s17, 3  ;;  %vm423_vm2 = vcmask 64512   ;;  %vm494_vm4 = vcmask 1043456   ;;  %s408_s17 = sadd.s32 1, %s1338_s17   ;;  %s1338_s17 = sphi %s1649_s17, %s408_s17   ;;  %v1334_v8 = vphi %v1647_v8, %v1812_v8   ;;  %v1330_v7 = vphi %v1645_v7, %v1811_v7   ;;  %v1326_v6 = vphi %v1643_v6, %v1810_v6  }
  0x8c   : >> { %840 = vmatprep.subr.bf16.mxu0 %v1345_v9  ;;  %842 = vmatprep.mubr.msk.bf16.mxu0 %vm1346_vm1, %v1345_v9  ;;  %s415_s18 = sshra.s32 %s822_s15, 3  ;;  %s470_s10 = ssub.s32 0, %s822_s15 }
  0x8d   : >> { %846 = vmatprep.subr.bf16.mxu1 %v1345_v9  ;;  %848 = vmatprep.mubr.msk.bf16.mxu1 %vm1346_vm1, %v1345_v9  ;;  %s823_s1 = sshll.u32 %s415_s18, 2  ;;  %v471_v12 = vstv %s470_s10  ;;  %p407_p5 = scmp.ge.s32.totalorder %s408_s17, 1 }
  0x8e   : >> { %s418_s4 = scalar_lea.vmem %s324_s20, %s823_s1 [#allocation6]  ;;  %vm472_vm3 = vcmp.gt.s32.totalorder %v396_v5, %v471_v12  ;;  %s421_s11 = scalar_lea.vmem %s333_s13, %s823_s1 [#allocation8]  ;;  %v543_v40 = vld [vmem:[%s342_s24] sm:$0xf] (%p407_p5)  ;;  %v1347_v41 = vmov (%p407_p5), 0.0   ;;  %vm1348_vm5 = vmmov (%p407_p5), 0   ;;  %vm593_vm6 = vcmask (%p407_p5), 261120  }
  0x8f   : >> { %v419_v10 = vld [vmem:[%s418_s4] sm:$0xf]  ;;  %v550_v42 = vsel (%p407_p5), %vm494_vm4, %v543_v40, 0  ;;  %p828_p12 = scmp.ne.s32.totalorder (%p407_p5), %s1306_s27, 3 }
  0x90   : >> { %v428_v11 = vsel %vm423_vm2, %v419_v10, 0  ;;  %v422_v19 = vld [vmem:[%s421_s11] sm:$0xf] }
  0x91   : >> { %841 = vmatpush3.bf16.xpose.msra.mxu0 %v428_v11  ;;  %v496_v20 = vsel %vm494_vm4, %v422_v19, 0  ;;  %v541_v46 = vld [vmem:[#allocation2] sm:$0xff] (%p407_p5) }
  0x92   : >> { %847 = vmatpush3.bf16.msra.mxu1 %v496_v20  ;;  %852 = vmatprep.subr.bf16.mxu0 (%p407_p5), %v1347_v41 }
  0x98   : >> { %843 = vmatmul.mubr.msk.bf16.vlgmr.msra.gmra.mxu0 %vm423_vm2, %v1635_v1 }
  0x99   : > { %854 = vmatprep.mubr.msk.bf16.mxu0 (%p407_p5), %vm1348_vm5, %v1347_v41  ;;  %853 = vmatpush3.bf16.msra.mxu0 (%p407_p5), %v550_v42 }
 0x158   : >> { %v464_v13 = vpop.f32.mrf.mxu0 }
 0x159   : >> { %v473_v14 = vsel %vm472_vm3, -inf, %v464_v13 }
 0x15a   : >> { %v844_v15 = vpop.f32.mrf.mxu0  ;;  %v474_v16 = vsel %vm423_vm2, %v473_v14, -inf }
 0x15b   : >> { %475 = vmax.xlane.f32.xlu0 %v474_v16 }
 0x15c   : >> { %v467_v17 = vpop.f32.mrf.mxu0 }
 0x15e   : >> { %v845_v18 = vpop.f32.mrf.mxu0 }
 0x1e4   : >> { %v476_v21 = vpop.xlane.xlu0 %475 }
 0x1e5   : >> { %v477_v22 = vmax.f32 %v1334_v8, %v476_v21  }
 0x1e7   : >> { %v478_v23 = vsub.f32 %v1334_v8, %v477_v22  ;;  %v481_v24 = vsub.f32 %v473_v14, %v477_v22  ;;  %v1812_v8 = vmov %v477_v22 }
 0x1e9   : >> { %v482_v25 = vmul.f32 1.442695, %v481_v24  ;;  %v479_v29 = vmul.f32 1.442695, %v478_v23 }
 0x1eb   : >> { %1036 = vpow2.f32 %v482_v25 }
 0x1ec   : >> { %1038 = vpow2.f32 %v479_v29 }
 0x1f8   : >> { %v1037_v26 = vpop.eup %1036 }
 0x1f9   : >> { %v485_v27 = vsel %vm423_vm2, %v1037_v26, 0.0  ;;  %v490_v28 = vpack.c.bf16 %v1037_v26, %v1037_v26  ;;  %v1039_v30 = vpop.eup %1038 }
 0x1fa   : >> { %486 = vadd.xlane.f32.xlu0 %v485_v27  ;;  %v484_v31 = vmul.f32 %v1330_v7, %v1039_v30  ;;  %v489_v34 = vmul.f32 %v1326_v6, %v1039_v30 }
 0x1fb   : >> { %849 = vmatmul.mubr.msk.bf16.vlgmr.msra.gmra.mxu1 %vm423_vm2, %v490_v28 }
 0x283   : >> { %v487_v32 = vpop.xlane.xlu0 %486 }
 0x284   : >> { %v488_v33 = vadd.f32 %v487_v32, %v484_v31  }
 0x286   : >> { %v1811_v7 = vmov %v488_v33  ;;  %1040 = vrcp.f32 (%p407_p5), %v488_v33 }
 0x293   : > { %v1041_v43 = vpop.eup (%p407_p5), %1040 }
 0x2bb   : >> { %v532_v35 = vpop.f32.mrf.mxu1 }
 0x2bc   : >> { %v538_v36 = vadd.f32 %v532_v35, %v489_v34  }
 0x2bd   : >> { %v850_v37 = vpop.f32.mrf.mxu1  ;;  %410 = sbr.rel (!%p407_p5) target bundleno = 139 (0x8b), region = 139 }
 0x2be   : >> { %v1810_v6 = vmov %v538_v36  ;;  %v540_v44 = vmul.f32 (%p407_p5), %v1041_v43, %v538_v36 }
 0x2bf   : >> { %v535_v38 = vpop.f32.mrf.mxu1 }
 0x2c0   : > { %v542_v45 = vpack.c.bf16 (%p407_p5), %v540_v44, %v540_v44 }
 0x2c1   : >> { %v851_v39 = vpop.f32.mrf.mxu1 }
 0x2c2   : > { %855 = vmatmul.mubr.msk.bf16.vlgmr.msra.gmra.mxu0 %vm423_vm2, %v542_v45  ;;  %s1813_s8 = sld [smem:[#allocation28_spill]] (!%p828_p12) }
 0x382   : > { %v586_v47 = vpop.f32.mrf.mxu0 }
 0x383   : > { %v592_v48 = vadd.f32 %v586_v47, %v541_v46 }
 0x384   : > { %v856_v49 = vpop.f32.mrf.mxu0  ;;  %598 = sbr.rel (%p828_p12) target bundleno = 912 (0x390), region = 71 }
 0x385   : > { %594 = vst.msk [vmem:[#allocation2] sm:$0xff] %vm593_vm6, %v592_v48 }
 0x386   : > { %v589_v50 = vpop.f32.mrf.mxu0 }
 0x388   : > { %v857_v51 = vpop.f32.mrf.mxu0 }
 0x389   : > { %v829_v53 = vld [vmem:[%s1813_s8] ss:$0 sm:$0xff] }
 0x38c   : > { %v599_v52 = vld [vmem:[#allocation2] sm:$0xff] }
 0x38d   : > { %v607_v54 = vadd.f32 %v829_v53, %v599_v52 }
 0x38f   : > { %608 = vst.msk [vmem:[%s383_s21] sm:$0xff] %vm593_vm6, %v607_v54 }
 0x390 PF: > { %s1814_s5 = sld [smem:[#allocation18_spill]]  ;;  %s624_s24 = sshll.u32 %s383_s21, 4  ;;  %s625_s24 = int_to_ptr.vmem [resolvable:$true] %s624_s24 }
 0x391   : > { %s1816_s12 = sld [smem:[#allocation29_spill]]  ;;  %s610_s17 = scalar_lea.sflag [#allocation5], %s381_s7 }
 0x392   : > { %s1154_s15 = scalar_lea.vmem %s625_s24, 128  ;;  %s1349_s18 = smov [#allocation11]  }
 0x393   : > { %p1155_p0 = scmp.ne.s32.totalorder %s625_s24, %s1154_s15  ;;  %s1158_s1 = sshll.u32 %s1349_s18, 4  ;;  %s1159_s1 = int_to_ptr.vmem [resolvable:$false] %s1158_s1 }
 0x394   : > { %s1160_s4 = scalar_lea.vmem %s1159_s1, 256  ;;  %p1161_p1 = scmp.lt.s32.totalorder %s625_s24, %s1159_s1 }
 0x395   : > { %p1156_p7 = pnand %p1155_p0, %p1495_p13  ;;  %p1162_p11 = scmp.lt.s32.totalorder %s1160_s4, %s1154_s15 }
 0x396   : > { %s831_s28 = sshll.u32 %s1814_s5, 7 }
 0x397   : > { %s622_s27 = scalar_lea.hbm %s1816_s12, %s831_s28  ;;  %p1157_p9 = pneg %p1156_p7 }
 0x398   : > { %p1163_p3 = por %p1162_p11, %p1161_p1 }
 0x39a   : > { %p1164_p2 = pnand %p1163_p3, %p1157_p9 }
 0x39c   : > { %1167 = shalt.err (!%p1164_p2)
}
 0x39d   : > { %s1168_s10 = scalar_lea.hbm %s622_s27, 128  ;;  %s1172_s21 = scalar_lea.hbm %s1816_s12, 256 }
 0x39e   : > { %p1169_p6 = scmp.ne.s32.totalorder %s622_s27, %s1168_s10  ;;  %p1173_p8 = scmp.lt.s32.totalorder %s622_s27, %s1816_s12 }
 0x39f   : > { %p1174_p5 = scmp.lt.s32.totalorder %s1172_s21, %s1168_s10 }
 0x3a0   : > { %p1170_p10 = pnand %p1169_p6, %p1495_p13 }
 0x3a1   : > { %p1175_p12 = por %p1174_p5, %p1173_p8 }
 0x3a2   : > { %p1171_p4 = pneg %p1170_p10 }
 0x3a4   : > { %p1176_p0 = pnand %p1175_p12, %p1171_p4 }
 0x3a6   : > { %1179 = shalt.err (!%p1176_p0)
}
 0x3a7   : > { %866 = dma.vmem_to_hbm [thread:$0]  (%p1495_p13), %s625_s24, 128, %s622_s27, %s610_s17  }
 0x3a8 PF: > { %s1817_s30 = sld [smem:[#allocation16_spill]]  ;;  %p886_p7 = scmp.ge.s32.totalorder %s1322_s6, 2 }
 0x3a9   : > { %s1818_s8 = sld [smem:[#allocation25_spill]] }
 0x3ae   : > { %s636_s5 = sand.u32 1, %s1817_s30  }
 0x3af   : > { %p1819_p9 = scmp.ne.s32.totalorder %s1818_s8, 0  ;;  %s637_s28 = scalar_lea.sflag [#allocation5], %s636_s5 }
 0x3b1   : > { %p882_p1 = pnand %p886_p7, %p1819_p9 }
 0x3b3   : > { %p883_p11 = pneg %p882_p1 }
 0x3b5   : > { %1265 = dma.done.wait (%p883_p11), %s637_s28, 128  }
 0x3b6   : > { %1267 = vsyncadd (%p883_p11), %s637_s28, 4294967168  ;;  %s27_s6 = sadd.s32 1, %s1322_s6   ;;  %s1821_s20 = sld [smem:[#allocation17_spill]] }
 0x3b7   : > { %p1716_p3 = scmp.ge.s32.totalorder %s27_s6, 10   ;;  %s1822_s13 = sld [smem:[#allocation22_spill]] }
 0x3b8   : > { %s1823_s27 = sld [smem:[#allocation23_spill]]  ;;  %s1827_s18 = smov %s1274_s19 }
 0x3b9   : > { %s1824_s28 = sld [smem:[#allocation19_spill]]  ;;  %s1830_s21 = smov %s1286_s22 }
 0x3ba   : > { %s1825_s17 = sld [smem:[#allocation20_spill]]  ;;  %s1831_s22 = smov %s1290_s23 }
 0x3bb   : > { %s1826_s30 = sld [smem:[#allocation21_spill]]  ;;  %s1832_s23 = smov %s1574_s16 }
 0x3bc   : > { %s1828_s19 = smov %s1821_s20  ;;  %s1833_s24 = smov %s1298_s25 }
 0x3bd   : > { %s1829_s20 = smov %s1822_s13  ;;  %s1834_s25 = smov %s1302_s26 }
 0x3be   : > { %s1835_s26 = smov %s1823_s27  ;;  %s1836_s27 = smov %s1314_s29 }
 0x3bf   :  { %26 = sbr.rel (!%p1716_p3) target bundleno = 19 (0x13), region = 150 }
 0x3c0   : > { %s1837_s29 = smov %s1825_s17 }
 0x3c4   :  { %642 = vsyncpa [#allocation4], 1 }
 0x3c5   :  { %644 = vsyncpa [#allocation4 + $0x1], 1 }
 0x3c6   :  { %645 = vsyncpa [#allocation7], 1 }
 0x3c7   :  { %647 = vsyncpa [#allocation7 + $0x1], 1 }
 0x3c8   :  { %648 = vsyncpa [#allocation10], 1 }
 0x3c9   :  { %650 = vsyncpa [#allocation10 + $0x1], 1 }
 0x3ca   :  { %651 = vsyncpa [#allocation5], 1 }
 0x3cb   :  { %653 = vsyncpa [#allocation5 + $0x1], 1 }

</bundles_post_ra>
